<compile_context>
chip_gen: v5e
topology: v5e:2x2
jax: 0.10.0
libtpu: 0.0.40
codegen_flags: <defaults>
</compile_context>

<pallas_src>
import jax
import jax.numpy as jnp
from jax.experimental import pallas as pl
from jax.experimental.pallas import tpu as pltpu


def _patch_embed_kernel(x_ref, w_ref, b_ref, o_ref):
    # x_ref: [1, K, TL]  patches for one batch slab (K on sublanes, patches on lanes)
    # w_ref: [E, K]      projection weight (resident across all grid steps)
    # b_ref: [E, 1]      bias (f32)
    # o_ref: [1, E, TL]  lane-dense, E-major output tile (final dtype)
    acc = jnp.dot(w_ref[...], x_ref[0],
                  preferred_element_type=jnp.float32)        # [E, TL] on MXU
    o_ref[0] = (acc + b_ref[...]).astype(o_ref.dtype)


def _pick_tile_l(L, K, E, in_itemsize, out_itemsize,
                 vmem_tile_budget=8 * 1024 * 1024, max_tile=8192):
    """Largest lane tile (multiple of 128) whose double-buffered x/out tiles
    fit in `vmem_tile_budget` bytes; small inputs use a single full block."""
    if L <= 128:
        return L
    per_col = 2 * (K * in_itemsize + E * out_itemsize)   # x + out, double-buffered
    tl = max(128, min(max_tile, vmem_tile_budget // per_col))
    tl = (tl // 128) * 128
    return L if L <= tl else tl


def patch_embed_matmul(patches_t, w_mat, b_mat, out_dtype, *, tile_l=None):
    """patches_t: [B, K, L], w_mat: [E, K], b_mat: [E, 1] -> [B, E, L]."""
    B, K, L = patches_t.shape
    E = w_mat.shape[0]
    out_itemsize = jnp.dtype(out_dtype).itemsize
    if tile_l is None:
        tile_l = _pick_tile_l(L, K, E, patches_t.dtype.itemsize, out_itemsize)
    tl = min(tile_l, L)          # small inputs: single full-extent block
    grid = (B, pl.cdiv(L, tl))   # ragged last tile handled by Pallas masking

    # Advisory cost hint for XLA's scheduler (this op is HBM-bound).
    flops = 2 * B * E * K * L
    bytes_accessed = (patches_t.size * patches_t.dtype.itemsize
                      + w_mat.size * w_mat.dtype.itemsize
                      + b_mat.size * 4
                      + B * E * L * out_itemsize)

    return pl.pallas_call(
        _patch_embed_kernel,
        out_shape=jax.ShapeDtypeStruct((B, E, L), out_dtype),
        grid_spec=pltpu.PrefetchScalarGridSpec(
            num_scalar_prefetch=0,
            grid=grid,
            in_specs=[
                pl.BlockSpec((1, K, tl), lambda b, l: (b, 0, l)),
                pl.BlockSpec((E, K), lambda b, l: (0, 0)),   # resident weight
                pl.BlockSpec((E, 1), lambda b, l: (0, 0)),   # resident bias
            ],
            out_specs=pl.BlockSpec((1, E, tl), lambda b, l: (b, 0, l)),
        ),
        compiler_params=pltpu.CompilerParams(
            dimension_semantics=("parallel", "parallel"),    # v7x 2-TC sharding
            vmem_limit_bytes=32 * 1024 * 1024),
        cost_estimate=pl.CostEstimate(flops=flops, transcendentals=0,
                                      bytes_accessed=bytes_accessed),
    )(patches_t, w_mat, b_mat)


def patch_embed_forward(x, weight, bias, patch_size, *, compute_dtype=None,
                        tile_l=None):
    """Forward of PatchEmbed (norm_layer=None).

    x:      [B, C, H, W]        (NCHW, like PyTorch)
    weight: [E, C, p, p]        (PyTorch Conv2d weight layout)
    bias:   [E]
    returns [B, E, H//p, W//p]  (after right/bottom padding if needed)
    """
    p_h, p_w = patch_size
    B, C, H, W = x.shape
    E = weight.shape[0]

    # Pad right / bottom so H, W are multiples of the patch size
    # (mirrors the F.pad calls in the PyTorch forward).
    pad_w = (p_w - W % p_w) % p_w
    pad_h = (p_h - H % p_h) % p_h
    if pad_w or pad_h:
        x = jnp.pad(x, ((0, 0), (0, 0), (0, pad_h), (0, pad_w)))
    Hp, Wp = x.shape[2] // p_h, x.shape[3] // p_w
    L = Hp * Wp
    K = C * p_h * p_w

    # Extract patches directly into the K-major layout the kernel consumes:
    # [B, K, L] with K ordered (c, ph, pw), matching how Conv2d's weight
    # [E, C, p, p] flattens to [E, K].
    # TODO(synk): for NHWC inputs this transpose becomes a cheap reshape; it
    # could also be fused into the kernel via per-row-strip DMA + in-VMEM
    # relayout to remove this extra HBM pass on NCHW inputs.
    xr = x.reshape(B, C, Hp, p_h, Wp, p_w)
    xr = jnp.transpose(xr, (0, 1, 3, 5, 2, 4))        # [B, C, ph, pw, Hp, Wp]
    patches_t = xr.reshape(B, K, L)

    w_mat = weight.reshape(E, K)                       # [E, K] (no transpose)
    b_mat = bias.reshape(E, 1).astype(jnp.float32)     # [E, 1]

    if compute_dtype is not None:                      # e.g. jnp.bfloat16
        patches_t = patches_t.astype(compute_dtype)
        w_mat = w_mat.astype(compute_dtype)

    out = patch_embed_matmul(patches_t, w_mat, b_mat, x.dtype,
                             tile_l=tile_l)            # [B, E, L], final dtype

    # norm_layer is None in this configuration -> no norm applied.
    # E-major kernel output -> NCHW is a pure reshape (no HBM transpose).
    return out.reshape(B, E, Hp, Wp)


if __name__ == "__main__":
    patch_size = (4, 4)
    in_chans = 3
    embed_dim = 96

    key = jax.random.PRNGKey(0)
    k_x, k_w, k_b, k_x2 = jax.random.split(key, 4)

    # Deterministic parameters (Conv2d weight [E, C, p, p], bias [E]).
    weight = jax.random.normal(
        k_w, (embed_dim, in_chans, patch_size[0], patch_size[1]),
        dtype=jnp.float32) * 0.02
    bias = jax.random.normal(k_b, (embed_dim,), dtype=jnp.float32) * 0.02

    def reference(xx):
        pw = (patch_size[1] - xx.shape[3] % patch_size[1]) % patch_size[1]
        ph = (patch_size[0] - xx.shape[2] % patch_size[0]) % patch_size[0]
        xp = jnp.pad(xx, ((0, 0), (0, 0), (0, ph), (0, pw)))
        return jax.lax.conv_general_dilated(
            xp, weight, window_strides=patch_size, padding="VALID",
            dimension_numbers=("NCHW", "OIHW", "NCHW")
        ) + bias[None, :, None, None]

    # Small input consistent with the module: B=2, C=3, H=W=16 (NCHW).
    x = jax.random.normal(k_x, (2, in_chans, 16, 16), dtype=jnp.float32)
    out = jax.block_until_ready(patch_embed_forward(x, weight, bias, patch_size))
    assert out.shape == (2, embed_dim, 4, 4), out.shape
    assert jnp.allclose(out, reference(x), atol=1e-4, rtol=1e-4), "mismatch (16x16)"

    # Also exercise the right/bottom padding path (H=W=18 -> padded to 20).
    x2 = jax.random.normal(k_x2, (2, in_chans, 18, 18), dtype=jnp.float32)
    out2 = jax.block_until_ready(patch_embed_forward(x2, weight, bias, patch_size))
    assert out2.shape == (2, embed_dim, 5, 5), out2.shape
    assert jnp.allclose(out2, reference(x2), atol=1e-4, rtol=1e-4), "mismatch (18x18)"

    print("KERNEL_OK")
</pallas_src>

<mosaic_0001>
module attributes {stable_mosaic.version = 11 : i64} {
  func.func @_patch_embed_kernel(%arg0: i32, %arg1: i32, %arg2: memref<1x48x16xf32, #tpu.memory_space<vmem>>, %arg3: memref<96x48xf32, #tpu.memory_space<vmem>>, %arg4: memref<96x1xf32, #tpu.memory_space<vmem>>, %arg5: memref<1x96x16xf32, #tpu.memory_space<vmem>>) attributes {dimension_semantics = [#tpu.dimension_semantics<parallel>, #tpu.dimension_semantics<parallel>], iteration_bounds = array<i64: 2, 1>, scalar_prefetch = 0 : i64, scratch_operands = 0 : i64, tpu.core_type = #tpu.core_type<tc>, window_params = [{transform_indices = @transform_0, window_bounds = array<i64: 1, 48, 16>}, {pipeline_mode = #tpu.pipeline_mode<synchronous>, transform_indices = @transform_1, window_bounds = array<i64: 96, 48>}, {pipeline_mode = #tpu.pipeline_mode<synchronous>, transform_indices = @transform_2, window_bounds = array<i64: 96, 1>}, {transform_indices = @transform_3, window_bounds = array<i64: 1, 96, 16>}]} {
    %c0 = arith.constant 0 : index
    %c0_0 = arith.constant 0 : index
    %0 = vector.load %arg3[%c0, %c0_0] : memref<96x48xf32, #tpu.memory_space<vmem>>, vector<96x48xf32>
    %c0_1 = arith.constant 0 : index
    %c0_2 = arith.constant 0 : index
    %c0_3 = arith.constant 0 : index
    %1 = vector.load %arg2[%c0_1, %c0_2, %c0_3] : memref<1x48x16xf32, #tpu.memory_space<vmem>>, vector<1x48x16xf32>
    %2 = vector.shape_cast %1 : vector<1x48x16xf32> to vector<48x16xf32>
    %cst = arith.constant dense<0.000000e+00> : vector<96x16xf32>
    %3 = tpu.matmul %0, %2, %cst {dimension_numbers = #tpu.dot_dimension_numbers<[1], [0], [0], [1], [0, 0, 1, 1], [], []>} : vector<96x48xf32>, vector<48x16xf32>, vector<96x16xf32> -> vector<96x16xf32>
    %c0_4 = arith.constant 0 : index
    %c0_5 = arith.constant 0 : index
    %4 = vector.load %arg4[%c0_4, %c0_5] : memref<96x1xf32, #tpu.memory_space<vmem>>, vector<96x1xf32>
    %5 = vector.broadcast %4 : vector<96x1xf32> to vector<96x16xf32>
    %6 = arith.addf %3, %5 : vector<96x16xf32>
    %c0_6 = arith.constant 0 : index
    %c0_7 = arith.constant 0 : index
    %c0_8 = arith.constant 0 : index
    %7 = vector.load %arg5[%c0_6, %c0_7, %c0_8] : memref<1x96x16xf32, #tpu.memory_space<vmem>>, vector<1x96x16xf32>
    %8 = vector.shape_cast %7 : vector<1x96x16xf32> to vector<96x16xf32>
    %9 = vector.shape_cast %6 : vector<96x16xf32> to vector<1x96x16xf32>
    tpu.vector_store %arg5[%c0_6, %c0_7, %c0_8], %9 {strides = array<i32>} : memref<1x96x16xf32, #tpu.memory_space<vmem>>, vector<1x96x16xf32>,
    return
  }
  func.func @transform_0(%arg0: i32, %arg1: i32) -> (i32, i32, i32) {
    %c0_i32 = arith.constant 0 : i32
    %c0_i32_0 = arith.constant 0 : i32
    return %arg0, %c0_i32, %arg1 : i32, i32, i32
  }
  func.func @transform_1(%arg0: i32, %arg1: i32) -> (i32, i32) {
    %c0_i32 = arith.constant 0 : i32
    %c0_i32_0 = arith.constant 0 : i32
    %c0_i32_1 = arith.constant 0 : i32
    return %c0_i32, %c0_i32_0 : i32, i32
  }
  func.func @transform_2(%arg0: i32, %arg1: i32) -> (i32, i32) {
    %c0_i32 = arith.constant 0 : i32
    %c0_i32_0 = arith.constant 0 : i32
    %c0_i32_1 = arith.constant 0 : i32
    return %c0_i32, %c0_i32_0 : i32, i32
  }
  func.func @transform_3(%arg0: i32, %arg1: i32) -> (i32, i32, i32) {
    %c0_i32 = arith.constant 0 : i32
    %c0_i32_0 = arith.constant 0 : i32
    return %arg0, %c0_i32, %arg1 : i32, i32, i32
  }
}

</mosaic_0001>

<bundles_post_ra>
// kernel: tpu_custom_call.1
= control target key start
LH: loop header
LB: loop body
LE: loop exit
PB: predicated region body
PF: predicated region fallthrough
CT: control target
= control target key end

     0   :  { %s592_s12 = smov 0   ;;  %s594_s13 = smov 0   ;;  %s739_s0 = inlined_call_operand.vmem [shape: f32[2,48,16], index: 0, kind: input, shape index: {}]   ;;  %s740_s1 = inlined_call_operand.vmem [shape: f32[96,48], index: 1, kind: input, shape index: {}]   ;;  %s741_s2 = inlined_call_operand.vmem [shape: f32[96,1], index: 2, kind: input, shape index: {}]   ;;  %s742_s3 = inlined_call_operand.vmem [shape: f32[2,96,16], index: 3, kind: output, shape index: {}]  }
   0x1   :  { %s596_s14 = smov 0  }
   0x2 LB: > { %s25_s15 = sadd.s32 1, %s565_s13  ;;  %p482_p0 = scmp.ge.s32.totalorder %s569_s14, 1  ;;  %s569_s14 = sphi %s596_s14, %s13_s14   ;;  %s565_s13 = sphi %s594_s13, %s744_s13   ;;  %s561_s12 = sphi %s592_s12, %s743_s12  }
   0x3   : > { %p27_p1 = scmp.ge.s32.totalorder %s25_s15, 2  ;;  %p156_p2 = scmp.lt.s32.totalorder %s569_s14, 3 }
   0x5   : > { %s746_s15 = smov (%p27_p1, %s25_s15), 0  ;;  %p157_p3 = pnand %p482_p0, %p156_p2 }
   0x6   : > { %p186_p4 = scmp.lt.s32.totalorder (!%p157_p3), %s561_s12, 1 }
   0x7   : > { %160 = sbr.rel (%p157_p3) target bundleno = 183 (0xb7), region = 32 }
   0xc   : > { %v222_v0 = vld [vmem:[%s741_s2 + $0x10] sm:$0xff]  ;;  %v220_v1 = vld [vmem:[%s741_s2] sm:$0xff]  ;;  %v571_v2 = vmov 0   ;;  %s748_s12 = smov (!%p186_p4, %s561_s12), 1  ;;  %v223_v6 = vld [vmem:[%s741_s2 + $0x18] sm:$0xff]  ;;  %vm292_vm0 = vcmask 392192  }
   0xd   : > { %545 = vset.pattern.permute.xlu1 %v571_v2  ;;  %544 = vset.pattern.permute.xlu0 %v571_v2  ;;  %s517_s20 = smul.u32 48, %s748_s12  ;;  %v224_v3 = vld [vmem:[%s741_s2 + $0x20] sm:$0xff]  ;;  %v221_v7 = vld [vmem:[%s741_s2 + $0x8] sm:$0xff]  ;;  %v205_v13 = vld [vmem:[%s740_s1 + $0x18] sm:$0xff]  ;;  %vm382_vm1 = vcmask 130048  }
   0xe   : > { %244 = vperm.xlu1 %545, %v222_v0   ;;  %234 = vperm.xlu0 %544, %v220_v1   ;;  %v202_v12 = vld [vmem:[%s740_s1] sm:$0xff]  ;;  %v208_v14 = vld [vmem:[%s740_s1 + $0x30] sm:$0xff]  ;;  %v211_v15 = vld [vmem:[%s740_s1 + $0x48] sm:$0xff]  ;;  %s518_s22 = smul.u32 96, %s748_s12 }
   0xf   : > { %546 = vset.pattern.permute.xlu2 %v571_v2  ;;  %s193_s25 = scalar_lea.vmem %s739_s0, %s517_s20  ;;  %v227_v16 = vld [vmem:[%s741_s2 + $0x38] sm:$0xff]  ;;  %v226_v17 = vld [vmem:[%s741_s2 + $0x30] sm:$0xff]  ;;  %v225_v18 = vld [vmem:[%s741_s2 + $0x28] sm:$0xff] }
  0x10   : > { %254 = vperm.xlu2 %546, %v224_v3   ;;  %v219_v4 = vld [vmem:[%s193_s25 + $0x28] sm:$0xff]  ;;  %v218_v5 = vld [vmem:[%s193_s25 + $0x20] sm:$0xff]  ;;  %v217_v8 = vld [vmem:[%s193_s25 + $0x18] sm:$0xff] }
  0x11   : > { %339 = vmatpush.msra.mxu0 %v219_v4  ;;  %499 = vmatpush.msra.mxu1 %v219_v4  ;;  %v216_v9 = vld [vmem:[%s193_s25 + $0x10] sm:$0xff]  ;;  %v215_v10 = vld [vmem:[%s193_s25 + $0x8] sm:$0xff]  ;;  %v214_v11 = vld [vmem:[%s193_s25] sm:$0xff]  ;;  %s704_s25 = scalar_lea.vmem %s742_s3, %s518_s22 }
  0x12   : > { %500 = vmatpush.msra.mxu2 %v219_v4  ;;  %501 = vmatpush.msra.mxu3 %v219_v4  ;;  %v203_v19 = vld [vmem:[%s740_s1 + $0x8] sm:$0xff]  ;;  %v206_v20 = vld [vmem:[%s740_s1 + $0x20] sm:$0xff]  ;;  %v209_v21 = vld [vmem:[%s740_s1 + $0x38] sm:$0xff] }
  0x13   : > { %340 = vmatpush.msra.mxu0 %v218_v5  ;;  %502 = vmatpush.msra.mxu1 %v218_v5  ;;  %v212_v22 = vld [vmem:[%s740_s1 + $0x50] sm:$0xff]  ;;  %v229_v24 = vld [vmem:[%s741_s2 + $0x48] sm:$0xff]  ;;  %v228_v25 = vld [vmem:[%s741_s2 + $0x40] sm:$0xff] }
  0x14   : > { %503 = vmatpush.msra.mxu2 %v218_v5  ;;  %504 = vmatpush.msra.mxu3 %v218_v5  ;;  %v230_v23 = vld [vmem:[%s741_s2 + $0x50] sm:$0xff]  ;;  %v207_v27 = vld [vmem:[%s740_s1 + $0x28] sm:$0xff]  ;;  %v210_v28 = vld [vmem:[%s740_s1 + $0x40] sm:$0xff] }
  0x15   : > { %341 = vmatpush.msra.mxu0 %v217_v8  ;;  %505 = vmatpush.msra.mxu1 %v217_v8  ;;  %v204_v26 = vld [vmem:[%s740_s1 + $0x10] sm:$0xff]  ;;  %v213_v29 = vld [vmem:[%s740_s1 + $0x58] sm:$0xff] }
  0x16   : > { %249 = vperm.xlu1 %545, %v223_v6   ;;  %239 = vperm.xlu0 %544, %v221_v7   ;;  %v231_v30 = vld [vmem:[%s741_s2 + $0x58] sm:$0xff] }
  0x17   : > { %506 = vmatpush.msra.mxu2 %v217_v8  ;;  %507 = vmatpush.msra.mxu3 %v217_v8 }
  0x18   : > { %342 = vmatpush.msra.mxu0 %v216_v9  ;;  %508 = vmatpush.msra.mxu1 %v216_v9 }
  0x19   : > { %509 = vmatpush.msra.mxu2 %v216_v9  ;;  %510 = vmatpush.msra.mxu3 %v216_v9 }
  0x1a   : > { %343 = vmatpush.msra.mxu0 %v215_v10  ;;  %511 = vmatpush.msra.mxu1 %v215_v10 }
  0x1b   : > { %512 = vmatpush.msra.mxu2 %v215_v10  ;;  %513 = vmatpush.msra.mxu3 %v215_v10 }
  0x1c   : > { %344 = vmatpush.msra.mxu0 %v214_v11  ;;  %514 = vmatpush.msra.mxu1 %v214_v11 }
  0x1d   : > { %515 = vmatpush.msra.mxu2 %v214_v11  ;;  %516 = vmatpush.msra.mxu3 %v214_v11 }
  0x1e   : > { %485 = vmatmul.msk.f32.vlgmr.msra.gmra.mxu0 %vm292_vm0, %v202_v12  ;;  %488 = vmatmul.msk.f32.vlgmr.msra.gmra.mxu1 %vm292_vm0, %v205_v13 }
  0x1f   : > { %491 = vmatmul.msk.f32.vlgmr.msra.gmra.mxu2 %vm292_vm0, %v208_v14  ;;  %494 = vmatmul.msk.f32.vlgmr.msra.gmra.mxu3 %vm292_vm0, %v211_v15 }
  0x20   : > { %269 = vperm.xlu1 %545, %v227_v16   ;;  %264 = vperm.xlu0 %544, %v226_v17  }
  0x21   : > { %259 = vperm.xlu2 %546, %v225_v18  }
  0x26   : > { %486 = vmatmul.msk.f32.gmra.mxu0 %vm292_vm0, %v203_v19  ;;  %489 = vmatmul.msk.f32.gmra.mxu1 %vm292_vm0, %v206_v20 }
  0x27   : > { %492 = vmatmul.msk.f32.gmra.mxu2 %vm292_vm0, %v209_v21  ;;  %495 = vmatmul.msk.f32.gmra.mxu3 %vm292_vm0, %v212_v22 }
  0x28   : > { %284 = vperm.xlu1 %545, %v230_v23   ;;  %279 = vperm.xlu0 %544, %v229_v24  }
  0x29   : > { %274 = vperm.xlu2 %546, %v228_v25  }
  0x2e   : > { %487 = vmatmul.msk.f32.gmra.mxu0 %vm292_vm0, %v204_v26  ;;  %490 = vmatmul.msk.f32.gmra.mxu1 %vm292_vm0, %v207_v27 }
  0x2f   : > { %493 = vmatmul.msk.f32.gmra.mxu2 %vm292_vm0, %v210_v28  ;;  %496 = vmatmul.msk.f32.gmra.mxu3 %vm292_vm0, %v213_v29 }
  0x31   : > { %289 = vperm.xlu2 %546, %v231_v30  }
  0x6a   : > { %v255_v34 = vpop.permute.xlu2 %254 }
  0x7b   : > { %v260_v41 = vpop.permute.xlu2 %259 }
  0x80   : > { %v235_v31 = vpop.permute.xlu0 %234  ;;  %v245_v32 = vpop.permute.xlu1 %244 }
  0x83   : > { %v275_v52 = vpop.permute.xlu2 %274 }
  0x88   : > { %v240_v33 = vpop.permute.xlu0 %239  ;;  %v250_v35 = vpop.permute.xlu1 %249 }
  0x8b   : > { %v290_v62 = vpop.permute.xlu2 %289 }
  0x92   : > { %v265_v36 = vpop.permute.xlu0 %264  ;;  %v270_v42 = vpop.permute.xlu1 %269 }
  0x9a   : > { %v280_v43 = vpop.permute.xlu0 %279  ;;  %v285_v53 = vpop.permute.xlu1 %284 }
  0x9b   : > { %v346_v37 = vpop.f32.mrf.mxu0  ;;  %v355_v38 = vpop.f32.mrf.mxu1 }
  0x9c   : > { %v347_v39 = vadd.f32 %v346_v37, %v235_v31  ;;  %v356_v40 = vadd.f32 %v355_v38, %v250_v35 }
  0x9e   : > { %383 = vst.msk [vmem:[%s704_s25] sm:$0xff] %vm382_vm1, %v347_v39 }
  0x9f   : > { %386 = vst.msk [vmem:[%s704_s25 + $0x18] sm:$0xff] %vm382_vm1, %v356_v40 }
  0xa2   : > { %v364_v44 = vpop.f32.mrf.mxu2  ;;  %v373_v45 = vpop.f32.mrf.mxu3 }
  0xa3   : > { %v365_v46 = vadd.f32 %v364_v44, %v265_v36  ;;  %v374_v47 = vadd.f32 %v373_v45, %v280_v43  ;;  %v349_v48 = vpop.f32.mrf.mxu0  ;;  %v358_v49 = vpop.f32.mrf.mxu1 }
  0xa4   : > { %v350_v50 = vadd.f32 %v349_v48, %v240_v33  ;;  %v359_v51 = vadd.f32 %v358_v49, %v255_v34 }
  0xa5   : > { %389 = vst.msk [vmem:[%s704_s25 + $0x30] sm:$0xff] %vm382_vm1, %v365_v46 }
  0xa6   : > { %392 = vst.msk [vmem:[%s704_s25 + $0x48] sm:$0xff] %vm382_vm1, %v374_v47 }
  0xa7   : > { %384 = vst.msk [vmem:[%s704_s25 + $0x8] sm:$0xff] %vm382_vm1, %v350_v50 }
  0xa8   : > { %387 = vst.msk [vmem:[%s704_s25 + $0x20] sm:$0xff] %vm382_vm1, %v359_v51 }
  0xaa   : > { %v367_v54 = vpop.f32.mrf.mxu2  ;;  %v376_v55 = vpop.f32.mrf.mxu3 }
  0xab   : > { %v368_v56 = vadd.f32 %v367_v54, %v270_v42  ;;  %v377_v57 = vadd.f32 %v376_v55, %v285_v53  ;;  %v352_v58 = vpop.f32.mrf.mxu0  ;;  %v361_v59 = vpop.f32.mrf.mxu1 }
  0xac   : > { %v353_v60 = vadd.f32 %v352_v58, %v245_v32  ;;  %v362_v61 = vadd.f32 %v361_v59, %v260_v41 }
  0xad   : > { %390 = vst.msk [vmem:[%s704_s25 + $0x38] sm:$0xff] %vm382_vm1, %v368_v56 }
  0xae   : > { %393 = vst.msk [vmem:[%s704_s25 + $0x50] sm:$0xff] %vm382_vm1, %v377_v57 }
  0xaf   : > { %385 = vst.msk [vmem:[%s704_s25 + $0x10] sm:$0xff] %vm382_vm1, %v353_v60 }
  0xb0   : > { %388 = vst.msk [vmem:[%s704_s25 + $0x28] sm:$0xff] %vm382_vm1, %v362_v61 }
  0xb2   : > { %v370_v63 = vpop.f32.mrf.mxu2  ;;  %v379_v0 = vpop.f32.mrf.mxu3 }
  0xb3   : > { %v371_v1 = vadd.f32 %v370_v63, %v275_v52  ;;  %v380_v2 = vadd.f32 %v379_v0, %v290_v62 }
  0xb5   : > { %391 = vst.msk [vmem:[%s704_s25 + $0x40] sm:$0xff] %vm382_vm1, %v371_v1 }
  0xb6   : > { %394 = vst.msk [vmem:[%s704_s25 + $0x58] sm:$0xff] %vm382_vm1, %v380_v2 }
  0xb7 PF: > { %s13_s14 = sadd.s32 1, %s569_s14   ;;  %s743_s12 = smov %s565_s13 }
  0xb8   : > { %p10_p5 = scmp.ge.s32.totalorder %s13_s14, 4   ;;  %s744_s13 = smov %s746_s15 }
  0xba   :  { %12 = sbr.rel (!%p10_p5) target bundleno = 2 (0x2), region = 62 }

</bundles_post_ra>
